<compile_context>
chip_gen: v7x
topology: tpu7x:2x2x1
jax: 0.10.0
libtpu: 0.0.40
codegen_flags: <defaults>
</compile_context>

<pallas_src>
import jax
import jax.numpy as jnp
from jax.experimental import pallas as pl
from jax.experimental.pallas import tpu as pltpu

# ---- synthetic cfg (deterministic, no checkpoint / config file) -------------
CFG_ALPHA = 1.0
CFG_BETA = 1.0
CFG_EPS = 1e-6      # dice eps
CFG_FUC_K = 10.0    # cfg.fuc_k -- only used by sigmoid_alpha, not in forward

POS_EPS = 0.001     # positive-pixel threshold inside single_image_loss


# -----------------------------------------------------------------------------
# host-side helpers
# -----------------------------------------------------------------------------
def _as_kernel_mask(x):
    """Masks are 0/1: force to bf16 so mask HBM traffic is never f32."""
    return x.astype(jnp.bfloat16)


def _pick_layout(h, w):
    """(rows, lane) view of an (h, w) map; lane is a multiple of 128 when
    possible so every store is a full, unmasked lane write."""
    hw = h * w
    for lane in (512, 256, 128):
        if hw % lane == 0:
            return hw // lane, lane
    return h, w                                  # fallback: masked lanes, still correct


def _vmem_capacity_bytes():
    try:
        return int(pltpu.get_tpu_info().vmem_capacity_bytes)
    except Exception:
        return 64 * 1024 * 1024                  # conservative (v7x-sized) default


def _vmem_limit_bytes(cap):
    return int(cap * 3 // 4)                     # 48 MiB on v7x, 96 MiB on v5e/v6e


def _pick_row_tile(n_rows, lane, pipelined_bytes_per_elem, budget_bytes):
    """Largest row tile whose double-buffered working set fits the budget.
    Tile must be a multiple of 16 (bf16-friendly), of 8, or the full extent."""
    max_rows = budget_bytes // max(1, 2 * pipelined_bytes_per_elem * lane)
    if n_rows <= max_rows:
        return n_rows
    for step in (16, 8):
        t = (max_rows // step) * step
        while t >= step:
            if n_rows % t == 0:
                return t
            t -= step
    return n_rows                                # fallback: full extent (always legal)


# -----------------------------------------------------------------------------
# Kernel 1: per-(batch, row-tile, channel) regression loss map + stats
#   grid = (b, nh, c): channel innermost -> train_mask tile reused across c.
#   outputs:
#     neg_ref  (bf16): loss with positives set to -inf (glue never re-reads tr)
#     stat_ref (f32) : (3, lane) lane-partials [pos_count, pos_sum, total_sum]
#   scratch:
#     acc_ref  (c, 3, lane) f32: per-channel accumulator across row tiles
# -----------------------------------------------------------------------------
def _reg_kernel(x_ref, t_ref, m_ref, neg_ref, stat_ref, acc_ref):
    hi = pl.program_id(1)
    ci = pl.program_id(2)

    x = x_ref[...].astype(jnp.float32)
    t = t_ref[...].astype(jnp.float32)           # bf16 mask -> f32 in-kernel
    m = m_ref[...].astype(jnp.float32)

    # exact sigmoid with a single EUP push (tanh), no VPU divide / approx recip
    p = 0.5 * (jnp.tanh(0.5 * x) + 1.0)
    diff = p - t
    loss = diff * diff * m                       # MSELoss(reduce=False) * train_mask

    pos = t >= POS_EPS
    posf = pos.astype(jnp.float32)

    # negatives-only map in bf16: positives -> -inf so the glue's descending
    # sort pushes them to the tail (tr_mask never re-read downstream).
    neg_ref[...] = jnp.where(pos, -jnp.inf, loss).astype(jnp.bfloat16)

    # sublane-only partial reductions (cheap VPU adds); lane reduce is in glue.
    pc = jnp.sum(posf, axis=0, keepdims=True)            # (1, lane)
    ps = jnp.sum(loss * posf, axis=0, keepdims=True)     # (1, lane)
    ts = jnp.sum(loss, axis=0, keepdims=True)            # (1, lane)
    upd = jnp.concatenate([pc, ps, ts], axis=0)          # (3, lane)

    @pl.when(hi == 0)
    def _():
        acc_ref[ci] = upd

    @pl.when(hi != 0)
    def _():
        acc_ref[ci] = acc_ref[ci] + upd

    # tiny block, DMAed out every step anyway; last row-tile's write wins.
    stat_ref[...] = acc_ref[ci]


def reg_loss_maps(x, tr, mask):
    """x, tr: (b, c, R, lane); mask: (b, R, lane)."""
    b, c, R, lane = x.shape
    cap = _vmem_capacity_bytes()
    budget = (2 * cap) // 5                      # ~40% of physical VMEM
    # pipelined bytes/elem: x f32 (4) + tr bf16 (2) + mask bf16 (2) + neg bf16 (2)
    th = _pick_row_tile(R, lane, 10, budget)
    nh = R // th

    neg_map, stats = pl.pallas_call(
        _reg_kernel,
        out_shape=(
            jax.ShapeDtypeStruct((b, c, R, lane), jnp.bfloat16),
            jax.ShapeDtypeStruct((b, c, 3, lane), jnp.float32),
        ),
        grid_spec=pltpu.PrefetchScalarGridSpec(
            num_scalar_prefetch=0,
            grid=(b, nh, c),                     # channel innermost
            in_specs=[
                pl.BlockSpec((None, None, th, lane), lambda bi, hi, ci: (bi, ci, hi, 0)),
                pl.BlockSpec((None, None, th, lane), lambda bi, hi, ci: (bi, ci, hi, 0)),
                # block index independent of ci -> DMAed once per (batch, row-tile)
                pl.BlockSpec((None, th, lane), lambda bi, hi, ci: (bi, hi, 0)),
            ],
            out_specs=[
                pl.BlockSpec((None, None, th, lane), lambda bi, hi, ci: (bi, ci, hi, 0)),
                pl.BlockSpec((None, None, 3, lane), lambda bi, hi, ci: (bi, ci, 0, 0)),
            ],
            scratch_shapes=[pltpu.VMEM((c, 3, lane), jnp.float32)],
        ),
        compiler_params=pltpu.CompilerParams(
            dimension_semantics=("parallel", "arbitrary", "arbitrary"),
            vmem_limit_bytes=_vmem_limit_bytes(cap)),
    )(x, tr, mask)
    return neg_map, stats


# -----------------------------------------------------------------------------
# Kernel 2: per-sample dice partial sums, row-tiled with a resident accumulator
#   grid = (b, nh): b "parallel" (multi-TC), rows "arbitrary" (accumulation).
# -----------------------------------------------------------------------------
def _dice_kernel(att_ref, gt_ref, m_ref, out_ref):
    hi = pl.program_id(1)

    p = 0.5 * (jnp.tanh(0.5 * att_ref[...].astype(jnp.float32)) + 1.0)
    g = gt_ref[...].astype(jnp.float32)
    m = m_ref[...].astype(jnp.float32)

    pm = p * m
    inter = jnp.sum(pm * g, axis=0, keepdims=True)        # (1, lane)
    sp = jnp.sum(pm, axis=0, keepdims=True)
    sg = jnp.sum(g * m, axis=0, keepdims=True)
    upd = jnp.concatenate([inter, sp, sg], axis=0)         # (3, lane)

    @pl.when(hi == 0)
    def _():
        out_ref[...] = upd

    @pl.when(hi != 0)
    def _():
        out_ref[...] = out_ref[...] + upd


def dice_partials(att, gt, mask):
    """att, gt, mask: (b, R, lane)."""
    b, R, lane = att.shape
    cap = _vmem_capacity_bytes()
    budget = (2 * cap) // 5
    # pipelined bytes/elem: att f32 (4) + gt bf16 (2) + mask bf16 (2)
    th = _pick_row_tile(R, lane, 8, budget)
    nh = R // th

    return pl.pallas_call(
        _dice_kernel,
        out_shape=jax.ShapeDtypeStruct((b, 3, lane), jnp.float32),
        grid_spec=pltpu.PrefetchScalarGridSpec(
            num_scalar_prefetch=0,
            grid=(b, nh),
            in_specs=[
                pl.BlockSpec((None, th, lane), lambda bi, hi: (bi, hi, 0)),
                pl.BlockSpec((None, th, lane), lambda bi, hi: (bi, hi, 0)),
                pl.BlockSpec((None, th, lane), lambda bi, hi: (bi, hi, 0)),
            ],
            out_specs=pl.BlockSpec((None, 3, lane), lambda bi, hi: (bi, 0, 0)),
        ),
        compiler_params=pltpu.CompilerParams(
            dimension_semantics=("parallel", "arbitrary"),
            vmem_limit_bytes=_vmem_limit_bytes(cap)),
    )(att, gt, mask)


# -----------------------------------------------------------------------------
# single_image_loss: branchy, data-dependent top-k -> jitted JAX glue, batched
# over (b*c) maps; ONE descending sort per map feeds both top-k and top-100.
# -----------------------------------------------------------------------------
def _single_image_loss_jax(neg_flat, stats3, hw):
    # neg_flat: (b*c, hw) bf16 loss with positives set to -inf
    # stats3:   (b*c, 3)  f32  [pos_count, pos_sum, total_sum]

    def per_map(neg_v, stat):
        pos_count_f, pos_sum, tot_sum = stat[0], stat[1], stat[2]
        pos_count = pos_count_f.astype(jnp.int32)
        neg_count = hw - pos_count
        k3 = 3 * pos_count
        neg_sum = tot_sum - pos_sum

        posi_loss = pos_sum / jnp.maximum(pos_count_f, 1.0)
        neg_mean_all = neg_sum / jnp.maximum(neg_count.astype(jnp.float32), 1.0)

        s = jnp.sort(neg_v)[::-1]                        # positives (-inf) at tail
        s = jnp.where(jnp.isfinite(s), s.astype(jnp.float32), 0.0)
        csum = jnp.cumsum(s)
        topk_mean = csum[jnp.clip(k3 - 1, 0, hw - 1)] / jnp.maximum(k3, 1).astype(jnp.float32)
        # pos_count == 0  =>  no -inf entries  =>  first 100 are the global top-100
        top100_mean = csum[min(99, hw - 1)] / 100.0

        nega_loss = jnp.where(neg_count < k3, neg_mean_all, topk_mean)
        return jnp.where(pos_count > 0, posi_loss + nega_loss, top100_mean)

    contribs = jax.vmap(per_map)(neg_flat, stats3)
    return jnp.sum(contribs)


# -----------------------------------------------------------------------------
# TextLoss.forward
# -----------------------------------------------------------------------------
def text_loss_forward(inputs, attention, train_mask, tr_mask,
                      expand_mask, train_expand_mask):
    b, c, h, w = inputs.shape
    hw = h * w
    R, lane = _pick_layout(h, w)

    # Narrow-dtype masks + lane-dense (rows, lane) views; reshapes are free,
    # tr gets one NHWC->NCHW pass in bf16 and is never re-read by the glue.
    train_mask_l = _as_kernel_mask(train_mask).reshape(b, R, lane)
    expand_mask_l = _as_kernel_mask(expand_mask).reshape(b, R, lane)
    train_expand_mask_l = _as_kernel_mask(train_expand_mask).reshape(b, R, lane)
    tr_l = jnp.transpose(_as_kernel_mask(tr_mask), (0, 3, 1, 2)).reshape(b, c, R, lane)
    x_l = inputs.astype(jnp.float32).reshape(b, c, R, lane)
    att_l = attention.astype(jnp.float32).reshape(b, R, lane)

    # ---- per-channel regression loss (kernel 1 + exact top-k glue) ----------
    neg_map, stats = reg_loss_maps(x_l, tr_l, train_mask_l)
    stat3 = jnp.sum(stats, axis=-1).reshape(b * c, 3)     # final lane reduce
    neg_flat = neg_map.reshape(b * c, hw)
    loss_sum = _single_image_loss_jax(neg_flat, stat3, hw) / b

    # ---- dice / seg loss (kernel 2) -----------------------------------------
    partials = dice_partials(att_l, expand_mask_l, train_expand_mask_l)
    sums = jnp.sum(partials, axis=(0, 2))                  # (3,) over batch+lanes
    inter, sp, sg = sums[0], sums[1], sums[2]
    seg_loss = 1.0 - 2.0 * inter / (sp + sg + CFG_EPS)

    aux_loss = CFG_BETA * seg_loss
    loss_all = CFG_ALPHA * loss_sum + aux_loss
    return loss_all, aux_loss


if __name__ == "__main__":
    key = jax.random.PRNGKey(0)
    b, c, h, w = 2, 4, 16, 16
    k1, k2, k3, k4, k5, k6 = jax.random.split(key, 6)

    inputs = jax.random.normal(k1, (b, c, h, w), jnp.float32)
    attention = jax.random.normal(k2, (b, h, w), jnp.float32)
    # masks arrive as f32 0/1 (like torch .float()); force-cast to bf16 inside.
    train_mask = (jax.random.uniform(k3, (b, h, w)) > 0.2).astype(jnp.float32)
    tr_mask = (jax.random.uniform(k4, (b, h, w, c)) > 0.9).astype(jnp.float32)
    expand_mask = (jax.random.uniform(k5, (b, h, w)) > 0.5).astype(jnp.float32)
    train_expand_mask = (jax.random.uniform(k6, (b, h, w)) > 0.2).astype(jnp.float32)

    fwd = jax.jit(text_loss_forward)
    loss_all, aux_loss = fwd(inputs, attention, train_mask, tr_mask,
                             expand_mask, train_expand_mask)
    jax.block_until_ready((loss_all, aux_loss))
    print("KERNEL_OK")
</pallas_src>

<mosaic_0001>
module attributes {stable_mosaic.version = 11 : i64} {
  func.func @_reg_kernel(%arg0: i32, %arg1: i32, %arg2: i32, %arg3: memref<1x1x1x256xf32, #tpu.memory_space<vmem>>, %arg4: memref<1x1x1x256xbf16, #tpu.memory_space<vmem>>, %arg5: memref<1x1x256xbf16, #tpu.memory_space<vmem>>, %arg6: memref<1x1x1x256xbf16, #tpu.memory_space<vmem>>, %arg7: memref<1x1x3x256xf32, #tpu.memory_space<vmem>>, %arg8: memref<4x3x256xf32, #tpu.memory_space<vmem>>) attributes {dimension_semantics = [#tpu.dimension_semantics<parallel>, #tpu.dimension_semantics<arbitrary>, #tpu.dimension_semantics<arbitrary>], iteration_bounds = array<i64: 2, 1, 4>, scalar_prefetch = 0 : i64, scratch_operands = 1 : i64, tpu.core_type = #tpu.core_type<tc>, window_params = [{transform_indices = @transform_0, window_bounds = array<i64: 1, 1, 1, 256>}, {transform_indices = @transform_1, window_bounds = array<i64: 1, 1, 1, 256>}, {transform_indices = @transform_2, window_bounds = array<i64: 1, 1, 256>}, {transform_indices = @transform_3, window_bounds = array<i64: 1, 1, 1, 256>}, {transform_indices = @transform_4, window_bounds = array<i64: 1, 1, 3, 256>}]} {
    %c0 = arith.constant 0 : index
    %c0_0 = arith.constant 0 : index
    %c0_1 = arith.constant 0 : index
    %c0_2 = arith.constant 0 : index
    %0 = vector.load %arg3[%c0, %c0_0, %c0_1, %c0_2] : memref<1x1x1x256xf32, #tpu.memory_space<vmem>>, vector<1x1x1x256xf32>
    %1 = vector.shape_cast %0 : vector<1x1x1x256xf32> to vector<1x256xf32>
    %c0_3 = arith.constant 0 : index
    %c0_4 = arith.constant 0 : index
    %c0_5 = arith.constant 0 : index
    %c0_6 = arith.constant 0 : index
    %2 = vector.load %arg4[%c0_3, %c0_4, %c0_5, %c0_6] : memref<1x1x1x256xbf16, #tpu.memory_space<vmem>>, vector<1x1x1x256xbf16>
    %3 = vector.shape_cast %2 : vector<1x1x1x256xbf16> to vector<1x256xbf16>
    %4 = arith.extf %3 : vector<1x256xbf16> to vector<1x256xf32>
    %c0_7 = arith.constant 0 : index
    %c0_8 = arith.constant 0 : index
    %c0_9 = arith.constant 0 : index
    %5 = vector.load %arg5[%c0_7, %c0_8, %c0_9] : memref<1x1x256xbf16, #tpu.memory_space<vmem>>, vector<1x1x256xbf16>
    %6 = vector.shape_cast %5 : vector<1x1x256xbf16> to vector<1x256xbf16>
    %7 = arith.extf %6 : vector<1x256xbf16> to vector<1x256xf32>
    %cst = arith.constant 5.000000e-01 : f32
    %8 = vector.broadcast %cst : f32 to vector<1x256xf32>
    %9 = arith.mulf %8, %1 : vector<1x256xf32>
    %10 = math.tanh %9 : vector<1x256xf32>
    %cst_10 = arith.constant 1.000000e+00 : f32
    %11 = vector.broadcast %cst_10 : f32 to vector<1x256xf32>
    %12 = arith.addf %10, %11 : vector<1x256xf32>
    %cst_11 = arith.constant 5.000000e-01 : f32
    %13 = vector.broadcast %cst_11 : f32 to vector<1x256xf32>
    %14 = arith.mulf %13, %12 : vector<1x256xf32>
    %15 = arith.subf %14, %4 : vector<1x256xf32>
    %16 = arith.mulf %15, %15 : vector<1x256xf32>
    %17 = arith.mulf %16, %7 : vector<1x256xf32>
    %cst_12 = arith.constant 1.000000e-03 : f32
    %18 = vector.broadcast %cst_12 : f32 to vector<1x256xf32>
    %19 = arith.cmpf oge, %4, %18 : vector<1x256xf32>
    %20 = arith.extui %19 : vector<1x256xi1> to vector<1x256xi32>
    %21 = arith.sitofp %20 : vector<1x256xi32> to vector<1x256xf32>
    %cst_13 = arith.constant 0xFF800000 : f32
    %22 = vector.broadcast %cst_13 : f32 to vector<1x256xf32>
    %23 = arith.select %19, %22, %17 : vector<1x256xi1>, vector<1x256xf32>
    %24 = arith.truncf %23 : vector<1x256xf32> to vector<1x256xbf16>
    %c0_14 = arith.constant 0 : index
    %c0_15 = arith.constant 0 : index
    %c0_16 = arith.constant 0 : index
    %c0_17 = arith.constant 0 : index
    %25 = vector.load %arg6[%c0_14, %c0_15, %c0_16, %c0_17] : memref<1x1x1x256xbf16, #tpu.memory_space<vmem>>, vector<1x1x1x256xbf16>
    %26 = vector.shape_cast %25 : vector<1x1x1x256xbf16> to vector<1x256xbf16>
    %27 = vector.shape_cast %24 : vector<1x256xbf16> to vector<1x1x1x256xbf16>
    tpu.vector_store %arg6[%c0_14, %c0_15, %c0_16, %c0_17], %27 {strides = array<i32>} : memref<1x1x1x256xbf16, #tpu.memory_space<vmem>>, vector<1x1x1x256xbf16>,
    %cst_18 = arith.constant dense<0.000000e+00> : vector<256xf32>
    %28 = vector.multi_reduction <add>, %21, %cst_18 [0] : vector<1x256xf32> to vector<256xf32>
    %29 = vector.shape_cast %28 : vector<256xf32> to vector<1x256xf32>
    %30 = arith.mulf %17, %21 : vector<1x256xf32>
    %cst_19 = arith.constant dense<0.000000e+00> : vector<256xf32>
    %31 = vector.multi_reduction <add>, %30, %cst_19 [0] : vector<1x256xf32> to vector<256xf32>
    %32 = vector.shape_cast %31 : vector<256xf32> to vector<1x256xf32>
    %cst_20 = arith.constant dense<0.000000e+00> : vector<256xf32>
    %33 = vector.multi_reduction <add>, %17, %cst_20 [0] : vector<1x256xf32> to vector<256xf32>
    %34 = vector.shape_cast %33 : vector<256xf32> to vector<1x256xf32>
    %35 = tpu.concatenate %29, %32, %34 in 0 : vector<1x256xf32>, vector<1x256xf32>, vector<1x256xf32> -> vector<3x256xf32>
    %c0_i32 = arith.constant 0 : i32
    %36 = arith.cmpi eq, %arg1, %c0_i32 : i32
    %37 = arith.extui %36 : i1 to i32
    %c0_i32_21 = arith.constant 0 : i32
    %38 = arith.cmpi ne, %37, %c0_i32_21 : i32
    scf.if %38 {
      %48 = arith.index_cast %arg2 : i32 to index
      %c0_30 = arith.constant 0 : index
      %c0_31 = arith.constant 0 : index
      %49 = vector.load %arg8[%48, %c0_30, %c0_31] : memref<4x3x256xf32, #tpu.memory_space<vmem>>, vector<1x3x256xf32>
      %50 = vector.shape_cast %49 : vector<1x3x256xf32> to vector<3x256xf32>
      %51 = vector.shape_cast %35 : vector<3x256xf32> to vector<1x3x256xf32>
      tpu.vector_store %arg8[%48, %c0_30, %c0_31], %51 {strides = array<i32>} : memref<4x3x256xf32, #tpu.memory_space<vmem>>, vector<1x3x256xf32>,
    } else {
    }
    %c0_i32_22 = arith.constant 0 : i32
    %39 = arith.cmpi ne, %arg1, %c0_i32_22 : i32
    %40 = arith.extui %39 : i1 to i32
    %c0_i32_23 = arith.constant 0 : i32
    %41 = arith.cmpi ne, %40, %c0_i32_23 : i32
    scf.if %41 {
      %48 = arith.index_cast %arg2 : i32 to index
      %c0_30 = arith.constant 0 : index
      %c0_31 = arith.constant 0 : index
      %49 = vector.load %arg8[%48, %c0_30, %c0_31] : memref<4x3x256xf32, #tpu.memory_space<vmem>>, vector<1x3x256xf32>
      %50 = vector.shape_cast %49 : vector<1x3x256xf32> to vector<3x256xf32>
      %51 = arith.addf %50, %35 : vector<3x256xf32>
      %52 = arith.index_cast %arg2 : i32 to index
      %c0_32 = arith.constant 0 : index
      %c0_33 = arith.constant 0 : index
      %53 = vector.load %arg8[%52, %c0_32, %c0_33] : memref<4x3x256xf32, #tpu.memory_space<vmem>>, vector<1x3x256xf32>
      %54 = vector.shape_cast %53 : vector<1x3x256xf32> to vector<3x256xf32>
      %55 = vector.shape_cast %51 : vector<3x256xf32> to vector<1x3x256xf32>
      tpu.vector_store %arg8[%52, %c0_32, %c0_33], %55 {strides = array<i32>} : memref<4x3x256xf32, #tpu.memory_space<vmem>>, vector<1x3x256xf32>,
    } else {
    }
    %42 = arith.index_cast %arg2 : i32 to index
    %c0_24 = arith.constant 0 : index
    %c0_25 = arith.constant 0 : index
    %43 = vector.load %arg8[%42, %c0_24, %c0_25] : memref<4x3x256xf32, #tpu.memory_space<vmem>>, vector<1x3x256xf32>
    %44 = vector.shape_cast %43 : vector<1x3x256xf32> to vector<3x256xf32>
    %c0_26 = arith.constant 0 : index
    %c0_27 = arith.constant 0 : index
    %c0_28 = arith.constant 0 : index
    %c0_29 = arith.constant 0 : index
    %45 = vector.load %arg7[%c0_26, %c0_27, %c0_28, %c0_29] : memref<1x1x3x256xf32, #tpu.memory_space<vmem>>, vector<1x1x3x256xf32>
    %46 = vector.shape_cast %45 : vector<1x1x3x256xf32> to vector<3x256xf32>
    %47 = vector.shape_cast %44 : vector<3x256xf32> to vector<1x1x3x256xf32>
    tpu.vector_store %arg7[%c0_26, %c0_27, %c0_28, %c0_29], %47 {strides = array<i32>} : memref<1x1x3x256xf32, #tpu.memory_space<vmem>>, vector<1x1x3x256xf32>,
    return
  }
  func.func @transform_0(%arg0: i32, %arg1: i32, %arg2: i32) -> (i32, i32, i32, i32) {
    %c0_i32 = arith.constant 0 : i32
    %c0_i32_0 = arith.constant 0 : i32
    return %arg0, %arg2, %arg1, %c0_i32 : i32, i32, i32, i32
  }
  func.func @transform_1(%arg0: i32, %arg1: i32, %arg2: i32) -> (i32, i32, i32, i32) {
    %c0_i32 = arith.constant 0 : i32
    %c0_i32_0 = arith.constant 0 : i32
    return %arg0, %arg2, %arg1, %c0_i32 : i32, i32, i32, i32
  }
  func.func @transform_2(%arg0: i32, %arg1: i32, %arg2: i32) -> (i32, i32, i32) {
    %c0_i32 = arith.constant 0 : i32
    %c0_i32_0 = arith.constant 0 : i32
    return %arg0, %arg1, %c0_i32 : i32, i32, i32
  }
  func.func @transform_3(%arg0: i32, %arg1: i32, %arg2: i32) -> (i32, i32, i32, i32) {
    %c0_i32 = arith.constant 0 : i32
    %c0_i32_0 = arith.constant 0 : i32
    return %arg0, %arg2, %arg1, %c0_i32 : i32, i32, i32, i32
  }
  func.func @transform_4(%arg0: i32, %arg1: i32, %arg2: i32) -> (i32, i32, i32, i32) {
    %c0_i32 = arith.constant 0 : i32
    %c0_i32_0 = arith.constant 0 : i32
    %c0_i32_1 = arith.constant 0 : i32
    return %arg0, %arg2, %c0_i32, %c0_i32_0 : i32, i32, i32, i32
  }
}

module attributes {stable_mosaic.version = 11 : i64} {
  func.func @_dice_kernel(%arg0: i32, %arg1: i32, %arg2: memref<1x1x256xf32, #tpu.memory_space<vmem>>, %arg3: memref<1x1x256xbf16, #tpu.memory_space<vmem>>, %arg4: memref<1x1x256xbf16, #tpu.memory_space<vmem>>, %arg5: memref<1x3x256xf32, #tpu.memory_space<vmem>>) attributes {dimension_semantics = [#tpu.dimension_semantics<parallel>, #tpu.dimension_semantics<arbitrary>], iteration_bounds = array<i64: 2, 1>, scalar_prefetch = 0 : i64, scratch_operands = 0 : i64, tpu.core_type = #tpu.core_type<tc>, window_params = [{transform_indices = @transform_0, window_bounds = array<i64: 1, 1, 256>}, {transform_indices = @transform_1, window_bounds = array<i64: 1, 1, 256>}, {transform_indices = @transform_2, window_bounds = array<i64: 1, 1, 256>}, {transform_indices = @transform_3, window_bounds = array<i64: 1, 3, 256>}]} {
    %c0 = arith.constant 0 : index
    %c0_0 = arith.constant 0 : index
    %c0_1 = arith.constant 0 : index
    %0 = vector.load %arg2[%c0, %c0_0, %c0_1] : memref<1x1x256xf32, #tpu.memory_space<vmem>>, vector<1x1x256xf32>
    %1 = vector.shape_cast %0 : vector<1x1x256xf32> to vector<1x256xf32>
    %cst = arith.constant 5.000000e-01 : f32
    %2 = vector.broadcast %cst : f32 to vector<1x256xf32>
    %3 = arith.mulf %2, %1 : vector<1x256xf32>
    %4 = math.tanh %3 : vector<1x256xf32>
    %cst_2 = arith.constant 1.000000e+00 : f32
    %5 = vector.broadcast %cst_2 : f32 to vector<1x256xf32>
    %6 = arith.addf %4, %5 : vector<1x256xf32>
    %cst_3 = arith.constant 5.000000e-01 : f32
    %7 = vector.broadcast %cst_3 : f32 to vector<1x256xf32>
    %8 = arith.mulf %7, %6 : vector<1x256xf32>
    %c0_4 = arith.constant 0 : index
    %c0_5 = arith.constant 0 : index
    %c0_6 = arith.constant 0 : index
    %9 = vector.load %arg3[%c0_4, %c0_5, %c0_6] : memref<1x1x256xbf16, #tpu.memory_space<vmem>>, vector<1x1x256xbf16>
    %10 = vector.shape_cast %9 : vector<1x1x256xbf16> to vector<1x256xbf16>
    %11 = arith.extf %10 : vector<1x256xbf16> to vector<1x256xf32>
    %c0_7 = arith.constant 0 : index
    %c0_8 = arith.constant 0 : index
    %c0_9 = arith.constant 0 : index
    %12 = vector.load %arg4[%c0_7, %c0_8, %c0_9] : memref<1x1x256xbf16, #tpu.memory_space<vmem>>, vector<1x1x256xbf16>
    %13 = vector.shape_cast %12 : vector<1x1x256xbf16> to vector<1x256xbf16>
    %14 = arith.extf %13 : vector<1x256xbf16> to vector<1x256xf32>
    %15 = arith.mulf %8, %14 : vector<1x256xf32>
    %16 = arith.mulf %15, %11 : vector<1x256xf32>
    %cst_10 = arith.constant dense<0.000000e+00> : vector<256xf32>
    %17 = vector.multi_reduction <add>, %16, %cst_10 [0] : vector<1x256xf32> to vector<256xf32>
    %18 = vector.shape_cast %17 : vector<256xf32> to vector<1x256xf32>
    %cst_11 = arith.constant dense<0.000000e+00> : vector<256xf32>
    %19 = vector.multi_reduction <add>, %15, %cst_11 [0] : vector<1x256xf32> to vector<256xf32>
    %20 = vector.shape_cast %19 : vector<256xf32> to vector<1x256xf32>
    %21 = arith.mulf %11, %14 : vector<1x256xf32>
    %cst_12 = arith.constant dense<0.000000e+00> : vector<256xf32>
    %22 = vector.multi_reduction <add>, %21, %cst_12 [0] : vector<1x256xf32> to vector<256xf32>
    %23 = vector.shape_cast %22 : vector<256xf32> to vector<1x256xf32>
    %24 = tpu.concatenate %18, %20, %23 in 0 : vector<1x256xf32>, vector<1x256xf32>, vector<1x256xf32> -> vector<3x256xf32>
    %c0_i32 = arith.constant 0 : i32
    %25 = arith.cmpi eq, %arg1, %c0_i32 : i32
    %26 = arith.extui %25 : i1 to i32
    %c0_i32_13 = arith.constant 0 : i32
    %27 = arith.cmpi ne, %26, %c0_i32_13 : i32
    scf.if %27 {
      %c0_16 = arith.constant 0 : index
      %c0_17 = arith.constant 0 : index
      %c0_18 = arith.constant 0 : index
      %31 = vector.load %arg5[%c0_16, %c0_17, %c0_18] : memref<1x3x256xf32, #tpu.memory_space<vmem>>, vector<1x3x256xf32>
      %32 = vector.shape_cast %31 : vector<1x3x256xf32> to vector<3x256xf32>
      %33 = vector.shape_cast %24 : vector<3x256xf32> to vector<1x3x256xf32>
      tpu.vector_store %arg5[%c0_16, %c0_17, %c0_18], %33 {strides = array<i32>} : memref<1x3x256xf32, #tpu.memory_space<vmem>>, vector<1x3x256xf32>,
    } else {
    }
    %c0_i32_14 = arith.constant 0 : i32
    %28 = arith.cmpi ne, %arg1, %c0_i32_14 : i32
    %29 = arith.extui %28 : i1 to i32
    %c0_i32_15 = arith.constant 0 : i32
    %30 = arith.cmpi ne, %29, %c0_i32_15 : i32
    scf.if %30 {
      %c0_16 = arith.constant 0 : index
      %c0_17 = arith.constant 0 : index
      %c0_18 = arith.constant 0 : index
      %31 = vector.load %arg5[%c0_16, %c0_17, %c0_18] : memref<1x3x256xf32, #tpu.memory_space<vmem>>, vector<1x3x256xf32>
      %32 = vector.shape_cast %31 : vector<1x3x256xf32> to vector<3x256xf32>
      %33 = arith.addf %32, %24 : vector<3x256xf32>
      %c0_19 = arith.constant 0 : index
      %c0_20 = arith.constant 0 : index
      %c0_21 = arith.constant 0 : index
      %34 = vector.load %arg5[%c0_19, %c0_20, %c0_21] : memref<1x3x256xf32, #tpu.memory_space<vmem>>, vector<1x3x256xf32>
      %35 = vector.shape_cast %34 : vector<1x3x256xf32> to vector<3x256xf32>
      %36 = vector.shape_cast %33 : vector<3x256xf32> to vector<1x3x256xf32>
      tpu.vector_store %arg5[%c0_19, %c0_20, %c0_21], %36 {strides = array<i32>} : memref<1x3x256xf32, #tpu.memory_space<vmem>>, vector<1x3x256xf32>,
    } else {
    }
    return
  }
  func.func @transform_0(%arg0: i32, %arg1: i32) -> (i32, i32, i32) {
    %c0_i32 = arith.constant 0 : i32
    %c0_i32_0 = arith.constant 0 : i32
    return %arg0, %arg1, %c0_i32 : i32, i32, i32
  }
  func.func @transform_1(%arg0: i32, %arg1: i32) -> (i32, i32, i32) {
    %c0_i32 = arith.constant 0 : i32
    %c0_i32_0 = arith.constant 0 : i32
    return %arg0, %arg1, %c0_i32 : i32, i32, i32
  }
  func.func @transform_2(%arg0: i32, %arg1: i32) -> (i32, i32, i32) {
    %c0_i32 = arith.constant 0 : i32
    %c0_i32_0 = arith.constant 0 : i32
    return %arg0, %arg1, %c0_i32 : i32, i32, i32
  }
  func.func @transform_3(%arg0: i32, %arg1: i32) -> (i32, i32, i32) {
    %c0_i32 = arith.constant 0 : i32
    %c0_i32_0 = arith.constant 0 : i32
    %c0_i32_1 = arith.constant 0 : i32
    return %arg0, %c0_i32, %c0_i32_0 : i32, i32, i32
  }
}

</mosaic_0001>

<bundles_post_ra>
// kernel: text_loss_forward.2
= control target key start
LH: loop header
LB: loop body
LE: loop exit
PB: predicated region body
PF: predicated region fallthrough
CT: control target
= control target key end

     0   :  { %s879_s15 = smov 0   ;;  %s881_s16 = smov 0   ;;  %s964_s0 = inlined_call_operand.vmem [shape: f32[2,4,1,256], index: 0, kind: input, shape index: {}]   ;;  %s965_s1 = inlined_call_operand.vmem [shape: bf16[2,4,1,256], index: 1, kind: input, shape index: {}]   ;;  %s966_s2 = inlined_call_operand.vmem [shape: bf16[2,1,256], index: 2, kind: input, shape index: {}]   ;;  %s967_s3 = inlined_call_operand.vmem [shape: bf16[2,4,1,256], index: 3, kind: output, shape index: {0}]   ;;  %s968_s4 = inlined_call_operand.vmem [shape: f32[2,4,3,256], index: 4, kind: output, shape index: {1}]  }
   0x1   :  { %s883_s17 = smov 0   ;;  %s885_s18 = smov 0  }
   0x2   :  { %s887_s19 = smov 0  }
   0x3 LB: > { %s27_s20 = sadd.s32 1, %s841_s17  ;;  %s34_s21 = sadd.s32 1, %s845_s18  ;;  %s849_s19 = sphi %s887_s19, %s15_s19   ;;  %s845_s18 = sphi %s885_s18, %s974_s18   ;;  %s841_s17 = sphi %s883_s17, %s973_s17   ;;  %s837_s16 = sphi %s881_s16, %s972_s16   ;;  %s833_s15 = sphi %s879_s15, %s971_s15  }
   0x4   : > { %p28_p0 = scmp.ge.s32.totalorder %s27_s20, 4  ;;  %p742_p1 = scmp.ge.s32.totalorder %s849_s19, 1 }
   0x5   : > { %p237_p2 = scmp.lt.s32.totalorder %s849_s19, 9 }
   0x6   : > { %s976_s20 = smov (%p28_p0, %s27_s20), 0  ;;  %s978_s21 = smov (!%p28_p0, %s34_s21), %s845_s18 }
   0x7   : > { %p238_p3 = pnand %p742_p1, %p237_p2  ;;  %p36_p4 = scmp.ge.s32.totalorder %s978_s21, 2 }
   0x8   : > { %p306_p5 = scmp.lt.s32.totalorder (!%p238_p3), %s837_s16, 1  ;;  %p308_p6 = scmp.lt.s32.totalorder (!%p238_p3), %s833_s15, 3  ;;  %v851_v2 = vmov (!%p238_p3), 1966171168   ;;  %v372_v4 = vlaneseq (!%p238_p3)  ;;  %v852_v11 = vmov (!%p238_p3), 857870592  }
   0x9   : > { %s980_s21 = smov (%p36_p4, %s978_s21), 0  ;;  %241 = sbr.rel (%p238_p3) target bundleno = 63 (0x3f), region = 32 }
   0xa   : > { %v370_v3 = vunpack.c.l.s4 (!%p238_p3), %v851_v2  ;;  %v373_v6 = vshrl.u32 (!%p238_p3), %v372_v4, 7  ;;  %v394_v12 = vunpack.c.l.s4 (!%p238_p3), %v852_v11  ;;  %v853_v20 = vmov (!%p238_p3), 0.0   ;;  %s763_s10 = sshll.u32 (!%p238_p3), %s833_s15, 3 }
   0xb   : > { %vm433_vm1 = vcmask (!%p238_p3), 1040384   ;;  %vm492_vm2 = vcmask (!%p238_p3), 1041408   ;;  %vm434_vm3 = vsmask.f32 (!%p238_p3), 256  ;;  %vm436_vm4 = vcmask (!%p238_p3), 1041409   ;;  %s505_s14 = scalar_lea.vmem (!%p238_p3), [#allocation2], %s763_s10 }
   0xc   : > { %v371_v5 = vunpack.c.0.s8 (!%p238_p3), %v370_v3  ;;  %v395_v19 = vunpack.c.0.s8 (!%p238_p3), %v394_v12  ;;  %v405_v24 = vsub.s32 (!%p238_p3), 0, %v373_v6  ;;  %v409_v26 = vsub.s32 (!%p238_p3), 2, %v373_v6  ;;  %vm435_vm6 = vmand (!%p238_p3), %vm433_vm1, %vm434_vm3 }
   0xd   : > { %v474_v29 = vsub.s32 (!%p238_p3), 1, %v373_v6  ;;  %vm437_vm5 = vsmask.f32 (!%p238_p3), 1280 }
   0xe   : > { %v374_v9 = vsub.s32 (!%p238_p3), %v371_v5, %v373_v6  ;;  %v398_v28 = vsub.s32 (!%p238_p3), %v395_v19, %v373_v6  ;;  %vm438_vm7 = vmand (!%p238_p3), %vm436_vm4, %vm437_vm5 }
   0xf   : > { %vm439_vm8 = vmor (!%p238_p3), %vm438_vm7, %vm435_vm6 }
  0x10   : > { %s982_s16 = smov (!%p306_p5, %s837_s16), 1 }
  0x11   : > { %s309_s22 = scalar_select %p308_p6, %s833_s15, 3 }
  0x12   : > { %s744_s23 = sshll.u32 %s982_s16, 3  ;;  %s747_s6 = sshll.u32 %s982_s16, 1 }
  0x13   : > { %s743_s24 = sshll.u32 %s309_s22, 1  ;;  %s337_s9 = scalar_lea.vmem %s966_s2, %s747_s6 }
  0x14   : > { %s913_s25 = sadd.s32 %s744_s23, %s743_s24  ;;  %v362_v10 = vld [vmem:[%s337_s9] sm:$0x3] }
  0x15   : > { %s317_s28 = scalar_lea.vmem %s964_s0, %s913_s25  ;;  %s329_s5 = scalar_lea.vmem %s965_s1, %s913_s25  ;;  %v363_v14 = vunpack.c.l.bf16 %v362_v10 }
  0x16   : > { %v359_v0 = vld [vmem:[%s317_s28] sm:$0x3]  ;;  %s349_s13 = scalar_lea.vmem %s967_s3, %s913_s25  ;;  %s752_s15 = sshll.u32 %s913_s25, 2 }
  0x17   : > { %v364_v1 = vmul.f32 0.5, %v359_v0  ;;  %v360_v7 = vld [vmem:[%s329_s5] sm:$0x3]  ;;  %v386_v23 = vrot.slane %v363_v14, %v374_v9  ;;  %s358_s23 = scalar_lea.vmem %s968_s4, %s752_s15 }
  0x18   : > { %v361_v8 = vunpack.c.l.bf16 %v360_v7  ;;  %v440_v49 = vld [vmem:[%s349_s13] sm:$0x3] }
  0x19   : > { %809 = vtanh.f32 %v364_v1 }
  0x1a   : > { %v375_v16 = vrot.slane %v361_v8, %v374_v9  ;;  %vm926_vm0 = vcmp.ge.f32.partialorder %v361_v8, 0.001 }
  0x1b   : > { %v753_v21 = vsel %vm926_vm0, 1.0, %v853_v20 }
  0x1c   : > { %v451_v27 = vrot.slane %v753_v21, %v374_v9  ;;  %v460_v32 = vrot.slane %v753_v21, %v405_v24  ;;  %v464_v33 = vrot.slane %v753_v21, %v409_v26 }
  0x23   : > { %v810_v13 = vpop.eup %809 }
  0x24   : > { %v366_v15 = vadd.f32 1.0, %v810_v13 }
  0x26   : > { %v367_v18 = vmul.f32 0.5, %v366_v15 }
  0x28   : > { %v377_v22 = vsub.f32 %v367_v18, %v375_v16 }
  0x2a   : > { %v378_v25 = vmul.f32 %v377_v22, %v377_v22 }
  0x2c   : > { %v388_v30 = vmul.f32 %v386_v23, %v378_v25 }
  0x2e   : > { %v453_v31 = vmul.f32 %v451_v27, %v388_v30  ;;  %v399_v34 = vrot.slane %v388_v30, %v398_v28  ;;  %v482_v35 = vrot.slane %v388_v30, %v405_v24  ;;  %v486_v36 = vrot.slane %v388_v30, %v474_v29 }
  0x30   : > { %v471_v37 = vrot.slane %v453_v31, %v405_v24  ;;  %v475_v38 = vrot.slane %v453_v31, %v474_v29  ;;  %v401_v39 = vsel %vm926_vm0, -inf, %v399_v34 }
  0x31   : > { %v406_v40 = vrot.slane %v401_v39, %v405_v24  ;;  %v410_v41 = vrot.slane %v401_v39, %v409_v26 }
  0x32   : > { %v490_v42 = vsel %vm433_vm1, %v460_v32, %v471_v37  ;;  %v491_v43 = vsel %vm433_vm1, %v464_v33, %v475_v38 }
  0x33   : > { %v493_v44 = vsel %vm492_vm2, %v490_v42, %v482_v35  ;;  %v494_v45 = vsel %vm492_vm2, %v491_v43, %v486_v36  ;;  %v754_v46 = vpack.c.bf16 %v410_v41, %v406_v40 }
  0x34   : > { %v501_v47 = vcombine.low %v493_v44, %v494_v45 }
  0x35   : > { %v424_v48 = vrot.slane %v754_v46, %v374_v9 }
  0x36   : > { %506 = vst [vmem:[%s505_s14] sm:$0x77] %v501_v47 }
  0x37   : > { %v431_v50 = vrot.slane %v424_v48, %v374_v9 }
  0x39   : > { %v441_v51 = vsel %vm439_vm8, %v431_v50, %v440_v49 }
  0x3a   : > { %442 = vst [vmem:[%s349_s13] sm:$0x3] %v441_v51 }
  0x3d   : > { %v524_v52 = vld [vmem:[%s505_s14] sm:$0x77] }
  0x3e   : > { %525 = vst [vmem:[%s358_s23] sm:$0x77] %v524_v52 }
  0x3f PF: > { %s15_s19 = sadd.s32 1, %s849_s19   ;;  %s971_s15 = smov %s841_s17 }
  0x40   : > { %p12_p7 = scmp.ge.s32.totalorder %s15_s19, 10   ;;  %s972_s16 = smov %s845_s18 }
  0x41   : > { %s973_s17 = smov %s976_s20  ;;  %s974_s18 = smov %s980_s21 }
  0x42   :  { %14 = sbr.rel (!%p12_p7) target bundleno = 3 (0x3), region = 91 }

// kernel: text_loss_forward.3
= control target key start
LH: loop header
LB: loop body
LE: loop exit
PB: predicated region body
PF: predicated region fallthrough
CT: control target
= control target key end

     0   :  { %s538_s12 = smov 0   ;;  %s540_s13 = smov 0   ;;  %s581_s0 = inlined_call_operand.vmem [shape: f32[2,1,256], index: 0, kind: input, shape index: {}]   ;;  %s582_s1 = inlined_call_operand.vmem [shape: bf16[2,1,256], index: 1, kind: input, shape index: {}]   ;;  %s583_s2 = inlined_call_operand.vmem [shape: bf16[2,1,256], index: 2, kind: input, shape index: {}]   ;;  %s584_s3 = inlined_call_operand.vmem [shape: f32[2,3,256], index: 3, kind: output, shape index: {}]  }
   0x1   :  { %s542_s14 = smov 0  }
   0x2 LB: > { %s25_s15 = sadd.s32 1, %s511_s13  ;;  %p457_p0 = scmp.ge.s32.totalorder %s515_s14, 1  ;;  %s515_s14 = sphi %s542_s14, %s13_s14   ;;  %s511_s13 = sphi %s540_s13, %s586_s13   ;;  %s507_s12 = sphi %s538_s12, %s585_s12  }
   0x3   : > { %p27_p1 = scmp.ge.s32.totalorder %s25_s15, 2  ;;  %p184_p2 = scmp.lt.s32.totalorder %s515_s14, 3 }
   0x5   : > { %s588_s15 = smov (%p27_p1, %s25_s15), 0  ;;  %p185_p3 = pnand %p457_p0, %p184_p2 }
   0x6   : > { %p227_p4 = scmp.lt.s32.totalorder (!%p185_p3), %s507_s12, 1  ;;  %v517_v2 = vmov (!%p185_p3), 1966171168   ;;  %v269_v4 = vlaneseq (!%p185_p3)  ;;  %vm322_vm0 = vcmask (!%p185_p3), 1040384   ;;  %vm325_vm1 = vcmask (!%p185_p3), 1041408  }
   0x7   : > { %188 = sbr.rel (%p185_p3) target bundleno = 46 (0x2e), region = 32  ;;  %v267_v3 = vunpack.c.l.s4 (!%p185_p3), %v517_v2 }
   0x8   : > { %v270_v6 = vshrl.u32 (!%p185_p3), %v269_v4, 7 }
   0x9   : > { %v268_v5 = vunpack.c.0.s8 (!%p185_p3), %v267_v3 }
   0xa   : > { %v292_v17 = vsub.s32 (!%p185_p3), 0, %v270_v6  ;;  %v296_v18 = vsub.s32 (!%p185_p3), 1, %v270_v6  ;;  %v318_v20 = vsub.s32 (!%p185_p3), 2, %v270_v6 }
   0xb   : > { %v271_v10 = vsub.s32 (!%p185_p3), %v268_v5, %v270_v6 }
   0xe   : > { %s590_s12 = smov (!%p227_p4, %s507_s12), 1 }
   0xf   : > { %s458_s16 = sshll.u32 %s590_s12, 1  ;;  %s465_s26 = sshll.u32 %s590_s12, 3 }
  0x10   : > { %s234_s19 = scalar_lea.vmem %s581_s0, %s458_s16  ;;  %s250_s22 = scalar_lea.vmem %s583_s2, %s458_s16 }
  0x11   : > { %v256_v0 = vld [vmem:[%s234_s19] sm:$0x3]  ;;  %s242_s25 = scalar_lea.vmem %s582_s1, %s458_s16  ;;  %s255_s29 = scalar_lea.vmem %s584_s3, %s465_s26 }
  0x12   : > { %v257_v1 = vmul.f32 0.5, %v256_v0  ;;  %v263_v7 = vld [vmem:[%s250_s22] sm:$0x3] }
  0x13   : > { %v261_v8 = vld [vmem:[%s242_s25] sm:$0x3]  ;;  %v264_v9 = vunpack.c.l.bf16 %v263_v7 }
  0x14   : > { %491 = vtanh.f32 %v257_v1  ;;  %v262_v11 = vunpack.c.l.bf16 %v261_v8 }
  0x15   : > { %v272_v14 = vrot.slane %v264_v9, %v271_v10 }
  0x16   : > { %v282_v16 = vrot.slane %v262_v11, %v271_v10  ;;  %v287_v19 = vmul.f32 %v264_v9, %v262_v11 }
  0x18   : > { %v315_v25 = vrot.slane %v287_v19, %v292_v17  ;;  %v319_v26 = vrot.slane %v287_v19, %v318_v20 }
  0x1e   : > { %v492_v12 = vpop.eup %491 }
  0x1f   : > { %v259_v13 = vadd.f32 1.0, %v492_v12 }
  0x21   : > { %v260_v15 = vmul.f32 0.5, %v259_v13 }
  0x23   : > { %v274_v21 = vmul.f32 %v272_v14, %v260_v15 }
  0x25   : > { %v284_v22 = vmul.f32 %v282_v16, %v274_v21  ;;  %v304_v23 = vrot.slane %v274_v21, %v292_v17  ;;  %v308_v24 = vrot.slane %v274_v21, %v296_v18 }
  0x27   : > { %v293_v27 = vrot.slane %v284_v22, %v292_v17  ;;  %v297_v28 = vrot.slane %v284_v22, %v296_v18 }
  0x29   : > { %v323_v29 = vsel %vm322_vm0, %v293_v27, %v304_v23  ;;  %v324_v30 = vsel %vm322_vm0, %v297_v28, %v308_v24 }
  0x2a   : > { %v326_v31 = vsel %vm325_vm1, %v323_v29, %v315_v25  ;;  %v327_v32 = vsel %vm325_vm1, %v324_v30, %v319_v26 }
  0x2b   : > { %v334_v33 = vcombine.low %v326_v31, %v327_v32 }
  0x2d   : > { %336 = vst [vmem:[%s255_s29] sm:$0x77] %v334_v33 }
  0x2e PF: > { %s13_s14 = sadd.s32 1, %s515_s14   ;;  %s585_s12 = smov %s511_s13 }
  0x2f   : > { %p10_p5 = scmp.ge.s32.totalorder %s13_s14, 4   ;;  %s586_s13 = smov %s588_s15 }
  0x31   :  { %12 = sbr.rel (!%p10_p5) target bundleno = 2 (0x2), region = 76 }

</bundles_post_ra>
